<compile_context>
chip_gen: v7x
topology: tpu7x:2x2x1
jax: 0.10.0
libtpu: 0.0.40
codegen_flags: <defaults>
</compile_context>

<pallas_src>
import jax
import jax.numpy as jnp
from jax.experimental import pallas as pl
from jax.experimental.pallas import tpu as pltpu

_MiB = 1024 * 1024


def _round_up(x, m):
    return (x + m - 1) // m * m


def _interp_matrix(out_size: int, in_size: int) -> jnp.ndarray:
    """Row-stochastic (out_size, in_size) bilinear-upsample matrix matching
    torch.nn.functional.interpolate(mode='bilinear', align_corners=False)."""
    scale = in_size / out_size
    j = jnp.arange(out_size, dtype=jnp.float32)
    src = scale * (j + 0.5) - 0.5
    src = jnp.maximum(src, 0.0)
    x0 = jnp.floor(src)
    lam1 = src - x0
    lam0 = 1.0 - lam1
    x0i = x0.astype(jnp.int32)
    x1i = jnp.minimum(x0i + 1, in_size - 1)
    a = jnp.zeros((out_size, in_size), jnp.float32)
    rows = jnp.arange(out_size)
    a = a.at[rows, x0i].add(lam0)
    a = a.at[rows, x1i].add(lam1)
    return a


def build_l1_multiscale_loss(pred_shapes, ref_shape, max_disparity,
                             scale_weights=None, normalize_weights=True,
                             interp_dtype=jnp.bfloat16):
    """Returns (loss_fn, weights, mats_f32, mats_cast).

    loss_fn(predictions: list of NCHW arrays, reference NCHW) -> scalar f32.
    `interp_dtype` is the MXU operand dtype of the bilinear-upsample matmuls
    (bf16 by default; pass jnp.float32 for bit-closer fidelity to PyTorch).
    """
    L = len(pred_shapes)
    N, C, H, W = ref_shape
    NC = N * C
    max_disp = float(max_disparity)

    # Build-time shape checks (level 0 must already be at reference resolution).
    assert L >= 1
    assert L + 1 <= 128, "too many supervision levels for one output tile"
    assert pred_shapes[0][2] == H and pred_shapes[0][3] == W, \
        "prediction[0] must match the reference spatial size"
    for s in pred_shapes:
        assert s[0] == N and s[1] == C, "prediction batch/channels must match reference"

    if scale_weights is None:
        weights = [1.0 / L] * L
    else:
        weights = list(map(float, scale_weights))
        if normalize_weights:
            s = sum(weights)
            weights = [w / s for w in weights]

    hw_shapes = [(s[2], s[3]) for s in pred_shapes]

    # Interpolation matrices; the 2**i scale is folded into A_h (exact: power
    # of two) so no per-pixel multiply is needed in the kernel.
    mats_f32 = [None]
    for i in range(1, L):
        h_i, w_i = hw_shapes[i]
        ah = _interp_matrix(H, h_i) * float(2 ** i)   # (H, h_i), rows sum to 2^i
        awt = _interp_matrix(W, w_i).T                # (w_i, W)
        mats_f32.append((ah, awt))
    mats_cast = [None] + [(ah.astype(interp_dtype), awt.astype(interp_dtype))
                          for (ah, awt) in mats_f32[1:]]

    # ------------------------------------------------------------------
    # Generation-aware VMEM budget + block sizing.
    # ------------------------------------------------------------------
    try:
        vmem_cap = int(pltpu.get_tpu_info().vmem_capacity_bytes)
    except Exception:
        vmem_cap = 64 * _MiB                      # conservative: assume v7x-sized VMEM

    if vmem_cap >= 100 * _MiB:                    # v5e / v6e (128 MiB physical VMEM)
        vmem_limit = 100 * _MiB
        prefer_two_blocks = False
    else:                                         # v7x: 64 MiB per TensorCore (or older/smaller)
        vmem_limit = min(44 * _MiB, max(vmem_cap - 8 * _MiB, 8 * _MiB))
        prefer_two_blocks = True                  # 2 TCs/chip -> keep >=2 parallel grid blocks

    in_isz = 4  # sized for f32 inputs (conservative if bf16 is passed)

    def _input_bytes(b):
        # ref + pred_0 at full resolution, plus every coarse level; account for
        # the (8, 128) sublane/lane padding of each VMEM tile.
        t = 2 * b * _round_up(H, 8) * _round_up(W, 128) * in_isz
        for i in range(1, L):
            h_i, w_i = hw_shapes[i]
            t += b * _round_up(h_i, 8) * _round_up(w_i, 128) * in_isz
        return t

    def _scratch_bytes(b):
        # rough bound on the f32 temporaries (mask, diff, |d|, smooth-l1,
        # one upsampled level, reduction temps).
        return 8 * b * H * _round_up(W, 128) * 4

    def _fits(b):
        return (_input_bytes(b) <= 12 * _MiB and                      # ~6-12 MiB / step
                2 * _input_bytes(b) + _scratch_bytes(b) + 6 * _MiB <= vmem_limit)

    divisors = [d for d in range(1, NC + 1) if NC % d == 0]
    fitting = [d for d in divisors if _fits(d)] or [1]
    if prefer_two_blocks:
        multi = [d for d in fitting if NC // d >= 2]
        block_nc = max(multi) if multi else max(fitting)
    else:
        block_nc = max(fitting)
    num_blocks = NC // block_nc

    need = 2 * _input_bytes(block_nc) + _scratch_bytes(block_nc) + 6 * _MiB
    vmem_limit = int(min(max(vmem_limit, need), max(vmem_cap, 32 * _MiB)))

    B = block_nc

    # ------------------------------------------------------------------
    # Kernel: one grid step = one block of `block_nc` (reference, pred_*)
    # slices; writes its own per-level partial sums + valid count into a
    # lane-dense (1, 8, 128) tile.  No cross-step accumulator -> grid axis is
    # "parallel" (megacore / 2-TC friendly).
    # ------------------------------------------------------------------
    def kernel(*refs):
        ref_ref = refs[0]
        p0_ref = refs[1]
        pc_refs = refs[2:1 + L]                     # coarse preds, levels 1..L-1
        mat_refs = refs[1 + L:1 + L + 2 * (L - 1)]  # (ah_1, awt_1, ah_2, awt_2, ...)
        out_ref = refs[-1]

        # Whole block as one (B*H, W) slab (leading-dim merge only).
        ref2 = ref_ref[...].astype(jnp.float32).reshape(B * H, W)
        valid = jnp.logical_and(ref2 > 0.0, ref2 < max_disp)

        def masked_sl1_sum(up):
            d = up - ref2
            ad = jnp.abs(d)
            sl1 = jnp.where(ad < 1.0, 0.5 * d * d, ad - 0.5)
            # mask via select (cheaper than bool->f32 cast + multiply)
            return jnp.sum(jnp.where(valid, sl1, 0.0))

        vals = [masked_sl1_sum(p0_ref[...].astype(jnp.float32).reshape(B * H, W))]

        for i in range(1, L):
            h_i, w_i = hw_shapes[i]
            ah = mat_refs[2 * (i - 1)][...]             # (H, h_i), 2^i folded in
            awt = mat_refs[2 * (i - 1) + 1][...]        # (w_i, W)
            p3 = pc_refs[i - 1][...].astype(interp_dtype)   # (B, h_i, w_i)

            # H-direction upsample: one batched MXU matmul over the block.
            ah_b = jnp.broadcast_to(ah, (B, H, h_i))
            u3 = jnp.einsum('bHh,bhw->bHw', ah_b, p3,
                            preferred_element_type=jnp.float32)       # (B, H, w_i)
            # W-direction upsample: single (B*H, w_i) @ (w_i, W) matmul.
            up = jnp.dot(u3.reshape(B * H, w_i).astype(interp_dtype), awt,
                         preferred_element_type=jnp.float32)          # (B*H, W)
            vals.append(masked_sl1_sum(up))

        # Valid-pixel count for this block (< 2^24 pixels per block -> f32 exact).
        vals.append(jnp.sum(valid.astype(jnp.float32)))

        # Lane-dense output tile: value idx lives in the lane index.
        lane = jax.lax.broadcasted_iota(jnp.int32, (8, 128), 1)
        tile = jnp.zeros((8, 128), jnp.float32)
        for idx, v in enumerate(vals):
            tile = jnp.where(lane == idx, v, tile)
        out_ref[...] = tile[None]

    # Inputs keep the NC axis leading, so every block's last two dims equal the
    # full array dims (always a legal BlockSpec, any block_nc divisor works).
    in_specs = [pl.BlockSpec((block_nc, H, W), lambda b: (b, 0, 0)),   # reference
                pl.BlockSpec((block_nc, H, W), lambda b: (b, 0, 0))]   # pred_0
    for i in range(1, L):
        h_i, w_i = hw_shapes[i]
        in_specs.append(pl.BlockSpec((block_nc, h_i, w_i), lambda b: (b, 0, 0)))
    for i in range(1, L):
        h_i, w_i = hw_shapes[i]
        in_specs.append(pl.BlockSpec((H, h_i), lambda b: (0, 0)))      # fetched once
        in_specs.append(pl.BlockSpec((w_i, W), lambda b: (0, 0)))      # fetched once

    call = pl.pallas_call(
        kernel,
        grid=(num_blocks,),
        in_specs=in_specs,
        out_specs=pl.BlockSpec((1, 8, 128), lambda b: (b, 0, 0)),
        out_shape=jax.ShapeDtypeStruct((num_blocks, 8, 128), jnp.float32),
        compiler_params=pltpu.CompilerParams(
            dimension_semantics=("parallel",),
            vmem_limit_bytes=vmem_limit),
    )

    mat_args = []
    for i in range(1, L):
        mat_args.extend(mats_cast[i])

    @jax.jit
    def loss_fn(predictions, reference):
        # Pure metadata reshapes (contiguous): no HBM-side copies or casts.
        ref3 = reference.reshape(NC, H, W)
        preds3 = [p.reshape(NC, p.shape[2], p.shape[3]) for p in predictions]
        partials = call(ref3, *preds3, *mat_args)        # (num_blocks, 8, 128)
        sums = jnp.sum(partials[:, 0, :L], axis=0)       # (L,) per-level sums
        # Per-block counts are exact integers in f32; accumulate them in int32
        # so the global count stays exact past 2^24 valid pixels.
        count = jnp.sum(partials[:, 0, L].astype(jnp.int32)).astype(jnp.float32)
        w = jnp.asarray(weights, jnp.float32)
        # NOTE: matches PyTorch — NaN if no pixel satisfies 0 < ref < max_disp.
        return jnp.dot(w, sums) / count

    return loss_fn, weights, mats_f32, mats_cast


def _reference_loss(predictions, reference, max_disp, weights, mats, mm_dtype):
    """Pure-JAX reference mirroring the kernel's dtype flow.

    mats[i] = (A_h * 2^i, A_w^T) in mm_dtype; upsample order = H then W."""
    N, C, H, W = reference.shape
    ref = reference.reshape(N * C, H, W).astype(jnp.float32)
    valid = (ref > 0.0) & (ref < max_disp)
    count = jnp.sum(valid).astype(jnp.float32)
    loss = jnp.float32(0.0)
    for i, p in enumerate(predictions):
        pp = p.reshape(N * C, p.shape[2], p.shape[3])
        if i == 0:
            up = pp.astype(jnp.float32)
        else:
            ah, awt = mats[i]
            u = jnp.einsum('Hh,bhw->bHw', ah.astype(mm_dtype), pp.astype(mm_dtype),
                           preferred_element_type=jnp.float32)
            up = jnp.einsum('bHw,wW->bHW', u.astype(mm_dtype), awt.astype(mm_dtype),
                            preferred_element_type=jnp.float32)
        d = up - ref
        ad = jnp.abs(d)
        sl1 = jnp.where(ad < 1.0, 0.5 * d * d, ad - 0.5)
        loss = loss + jnp.float32(weights[i]) * jnp.sum(jnp.where(valid, sl1, 0.0)) / count
    return loss


if __name__ == "__main__":
    N, C, H, W = 2, 1, 16, 16
    supervision_levels = 3
    max_disparity = 64.0
    scale_weights = [0.5, 0.3, 0.2]

    key = jax.random.PRNGKey(0)
    kref, kpred = jax.random.split(key)

    reference = jax.random.uniform(
        kref, (N, C, H, W), jnp.float32, 0.0, max_disparity * 1.2)

    predictions = []
    pred_shapes = []
    for i in range(supervision_levels):
        h, w = H >> i, W >> i
        ki = jax.random.fold_in(kpred, i)
        predictions.append(
            jax.random.uniform(ki, (N, C, h, w), jnp.float32, 0.0, max_disparity))
        pred_shapes.append((N, C, h, w))

    loss_fn, weights, mats_f32, mats_cast = build_l1_multiscale_loss(
        pred_shapes, (N, C, H, W), max_disparity,
        scale_weights=scale_weights, normalize_weights=True,
        interp_dtype=jnp.bfloat16)

    loss = loss_fn(predictions, reference)
    jax.block_until_ready(loss)

    # Structural check: same bf16-operand / f32-accumulate path in plain JAX.
    ref_bf16 = _reference_loss(predictions, reference, max_disparity, weights,
                               mats_cast, jnp.bfloat16)
    # Semantic check against the full-f32 original math (looser: bf16 MXU ops;
    # pass interp_dtype=jnp.float32 to build_l1_multiscale_loss for tighter
    # fidelity to the PyTorch f32 bilinear path).
    ref_f32 = _reference_loss(predictions, reference, max_disparity, weights,
                              mats_f32, jnp.float32)

    assert bool(jnp.isfinite(loss)), loss
    assert jnp.allclose(loss, ref_bf16, rtol=1e-3, atol=1e-3), (loss, ref_bf16)
    assert jnp.allclose(loss, ref_f32, rtol=2e-2, atol=2e-2), (loss, ref_f32)

    print("KERNEL_OK")
</pallas_src>

<mosaic_0001>
module attributes {stable_mosaic.version = 11 : i64} {
  func.func @kernel(%arg0: i32, %arg1: memref<1x16x16xf32, #tpu.memory_space<vmem>>, %arg2: memref<1x16x16xf32, #tpu.memory_space<vmem>>, %arg3: memref<1x8x8xf32, #tpu.memory_space<vmem>>, %arg4: memref<1x4x4xf32, #tpu.memory_space<vmem>>, %arg5: memref<16x8xbf16, #tpu.memory_space<vmem>>, %arg6: memref<8x16xbf16, #tpu.memory_space<vmem>>, %arg7: memref<16x4xbf16, #tpu.memory_space<vmem>>, %arg8: memref<4x16xbf16, #tpu.memory_space<vmem>>, %arg9: memref<1x8x128xf32, #tpu.memory_space<vmem>>) attributes {dimension_semantics = [#tpu.dimension_semantics<parallel>], iteration_bounds = array<i64: 2>, scalar_prefetch = 0 : i64, scratch_operands = 0 : i64, tpu.core_type = #tpu.core_type<tc>, window_params = [{transform_indices = @transform_0, window_bounds = array<i64: 1, 16, 16>}, {transform_indices = @transform_1, window_bounds = array<i64: 1, 16, 16>}, {transform_indices = @transform_2, window_bounds = array<i64: 1, 8, 8>}, {transform_indices = @transform_3, window_bounds = array<i64: 1, 4, 4>}, {pipeline_mode = #tpu.pipeline_mode<synchronous>, transform_indices = @transform_4, window_bounds = array<i64: 16, 8>}, {pipeline_mode = #tpu.pipeline_mode<synchronous>, transform_indices = @transform_5, window_bounds = array<i64: 8, 16>}, {pipeline_mode = #tpu.pipeline_mode<synchronous>, transform_indices = @transform_6, window_bounds = array<i64: 16, 4>}, {pipeline_mode = #tpu.pipeline_mode<synchronous>, transform_indices = @transform_7, window_bounds = array<i64: 4, 16>}, {transform_indices = @transform_8, window_bounds = array<i64: 1, 8, 128>}]} {
    %c0 = arith.constant 0 : index
    %c0_0 = arith.constant 0 : index
    %c0_1 = arith.constant 0 : index
    %0 = vector.load %arg1[%c0, %c0_0, %c0_1] : memref<1x16x16xf32, #tpu.memory_space<vmem>>, vector<1x16x16xf32>
    %1 = vector.shape_cast %0 : vector<1x16x16xf32> to vector<16x16xf32>
    %cst = arith.constant 0.000000e+00 : f32
    %2 = vector.broadcast %cst : f32 to vector<16x16xf32>
    %3 = arith.cmpf ogt, %1, %2 : vector<16x16xf32>
    %cst_2 = arith.constant 6.400000e+01 : f32
    %4 = vector.broadcast %cst_2 : f32 to vector<16x16xf32>
    %5 = arith.cmpf olt, %1, %4 : vector<16x16xf32>
    %6 = arith.andi %3, %5 : vector<16x16xi1>
    %c0_3 = arith.constant 0 : index
    %c0_4 = arith.constant 0 : index
    %c0_5 = arith.constant 0 : index
    %7 = vector.load %arg2[%c0_3, %c0_4, %c0_5] : memref<1x16x16xf32, #tpu.memory_space<vmem>>, vector<1x16x16xf32>
    %8 = vector.shape_cast %7 : vector<1x16x16xf32> to vector<16x16xf32>
    %9 = arith.subf %8, %1 : vector<16x16xf32>
    %10 = math.absf %9 : vector<16x16xf32>
    %cst_6 = arith.constant 1.000000e+00 : f32
    %11 = vector.broadcast %cst_6 : f32 to vector<16x16xf32>
    %12 = arith.cmpf olt, %10, %11 : vector<16x16xf32>
    %cst_7 = arith.constant 5.000000e-01 : f32
    %13 = vector.broadcast %cst_7 : f32 to vector<16x16xf32>
    %14 = arith.mulf %13, %9 : vector<16x16xf32>
    %15 = arith.mulf %14, %9 : vector<16x16xf32>
    %cst_8 = arith.constant 5.000000e-01 : f32
    %16 = vector.broadcast %cst_8 : f32 to vector<16x16xf32>
    %17 = arith.subf %10, %16 : vector<16x16xf32>
    %18 = arith.select %12, %15, %17 : vector<16x16xi1>, vector<16x16xf32>
    %cst_9 = arith.constant 0.000000e+00 : f32
    %19 = vector.broadcast %cst_9 : f32 to vector<16x16xf32>
    %20 = arith.select %6, %18, %19 : vector<16x16xi1>, vector<16x16xf32>
    %21 = vector.shape_cast %20 : vector<16x16xf32> to vector<1x16x16xf32>
    %cst_10 = arith.constant dense<0.000000e+00> : vector<1xf32>
    %22 = vector.multi_reduction <add>, %21, %cst_10 [1, 2] : vector<1x16x16xf32> to vector<1xf32>
    %23 = vector.shape_cast %22 : vector<1xf32> to vector<1x1x1xf32>
    %24 = vector.extract %23[0, 0, 0] : f32 from vector<1x1x1xf32>
    %c0_11 = arith.constant 0 : index
    %c0_12 = arith.constant 0 : index
    %25 = vector.load %arg5[%c0_11, %c0_12] : memref<16x8xbf16, #tpu.memory_space<vmem>>, vector<16x8xbf16>
    %c0_13 = arith.constant 0 : index
    %c0_14 = arith.constant 0 : index
    %26 = vector.load %arg6[%c0_13, %c0_14] : memref<8x16xbf16, #tpu.memory_space<vmem>>, vector<8x16xbf16>
    %c0_15 = arith.constant 0 : index
    %c0_16 = arith.constant 0 : index
    %c0_17 = arith.constant 0 : index
    %27 = vector.load %arg3[%c0_15, %c0_16, %c0_17] : memref<1x8x8xf32, #tpu.memory_space<vmem>>, vector<1x8x8xf32>
    %28 = arith.truncf %27 : vector<1x8x8xf32> to vector<1x8x8xbf16>
    %29 = vector.shape_cast %25 : vector<16x8xbf16> to vector<1x16x8xbf16>
    "tpu.trace_start"() <{level = 10 : i32, message = "bHh,bhw->bHw"}> : () -> ()
    %cst_18 = arith.constant dense<0.000000e+00> : vector<1x16x8xf32>
    %30 = tpu.matmul %29, %28, %cst_18 {dimension_numbers = #tpu.dot_dimension_numbers<[2], [1], [1], [2], [0, 0, 0, 1, 1, 2], [0], [0]>} : vector<1x16x8xbf16>, vector<1x8x8xbf16>, vector<1x16x8xf32> -> vector<1x16x8xf32>
    "tpu.trace_stop"() : () -> ()
    %31 = vector.shape_cast %30 : vector<1x16x8xf32> to vector<16x8xf32>
    %32 = arith.truncf %31 : vector<16x8xf32> to vector<16x8xbf16>
    %cst_19 = arith.constant dense<0.000000e+00> : vector<16x16xf32>
    %33 = tpu.matmul %32, %26, %cst_19 {dimension_numbers = #tpu.dot_dimension_numbers<[1], [0], [0], [1], [0, 0, 1, 1], [], []>} : vector<16x8xbf16>, vector<8x16xbf16>, vector<16x16xf32> -> vector<16x16xf32>
    %34 = arith.subf %33, %1 : vector<16x16xf32>
    %35 = math.absf %34 : vector<16x16xf32>
    %cst_20 = arith.constant 1.000000e+00 : f32
    %36 = vector.broadcast %cst_20 : f32 to vector<16x16xf32>
    %37 = arith.cmpf olt, %35, %36 : vector<16x16xf32>
    %cst_21 = arith.constant 5.000000e-01 : f32
    %38 = vector.broadcast %cst_21 : f32 to vector<16x16xf32>
    %39 = arith.mulf %38, %34 : vector<16x16xf32>
    %40 = arith.mulf %39, %34 : vector<16x16xf32>
    %cst_22 = arith.constant 5.000000e-01 : f32
    %41 = vector.broadcast %cst_22 : f32 to vector<16x16xf32>
    %42 = arith.subf %35, %41 : vector<16x16xf32>
    %43 = arith.select %37, %40, %42 : vector<16x16xi1>, vector<16x16xf32>
    %cst_23 = arith.constant 0.000000e+00 : f32
    %44 = vector.broadcast %cst_23 : f32 to vector<16x16xf32>
    %45 = arith.select %6, %43, %44 : vector<16x16xi1>, vector<16x16xf32>
    %46 = vector.shape_cast %45 : vector<16x16xf32> to vector<1x16x16xf32>
    %cst_24 = arith.constant dense<0.000000e+00> : vector<1xf32>
    %47 = vector.multi_reduction <add>, %46, %cst_24 [1, 2] : vector<1x16x16xf32> to vector<1xf32>
    %48 = vector.shape_cast %47 : vector<1xf32> to vector<1x1x1xf32>
    %49 = vector.extract %48[0, 0, 0] : f32 from vector<1x1x1xf32>
    %c0_25 = arith.constant 0 : index
    %c0_26 = arith.constant 0 : index
    %50 = vector.load %arg7[%c0_25, %c0_26] : memref<16x4xbf16, #tpu.memory_space<vmem>>, vector<16x4xbf16>
    %c0_27 = arith.constant 0 : index
    %c0_28 = arith.constant 0 : index
    %51 = vector.load %arg8[%c0_27, %c0_28] : memref<4x16xbf16, #tpu.memory_space<vmem>>, vector<4x16xbf16>
    %c0_29 = arith.constant 0 : index
    %c0_30 = arith.constant 0 : index
    %c0_31 = arith.constant 0 : index
    %52 = vector.load %arg4[%c0_29, %c0_30, %c0_31] : memref<1x4x4xf32, #tpu.memory_space<vmem>>, vector<1x4x4xf32>
    %53 = arith.truncf %52 : vector<1x4x4xf32> to vector<1x4x4xbf16>
    %54 = vector.shape_cast %50 : vector<16x4xbf16> to vector<1x16x4xbf16>
    "tpu.trace_start"() <{level = 10 : i32, message = "bHh,bhw->bHw"}> : () -> ()
    %cst_32 = arith.constant dense<0.000000e+00> : vector<1x16x4xf32>
    %55 = tpu.matmul %54, %53, %cst_32 {dimension_numbers = #tpu.dot_dimension_numbers<[2], [1], [1], [2], [0, 0, 0, 1, 1, 2], [0], [0]>} : vector<1x16x4xbf16>, vector<1x4x4xbf16>, vector<1x16x4xf32> -> vector<1x16x4xf32>
    "tpu.trace_stop"() : () -> ()
    %56 = vector.shape_cast %55 : vector<1x16x4xf32> to vector<16x4xf32>
    %57 = arith.truncf %56 : vector<16x4xf32> to vector<16x4xbf16>
    %cst_33 = arith.constant dense<0.000000e+00> : vector<16x16xf32>
    %58 = tpu.matmul %57, %51, %cst_33 {dimension_numbers = #tpu.dot_dimension_numbers<[1], [0], [0], [1], [0, 0, 1, 1], [], []>} : vector<16x4xbf16>, vector<4x16xbf16>, vector<16x16xf32> -> vector<16x16xf32>
    %59 = arith.subf %58, %1 : vector<16x16xf32>
    %60 = math.absf %59 : vector<16x16xf32>
    %cst_34 = arith.constant 1.000000e+00 : f32
    %61 = vector.broadcast %cst_34 : f32 to vector<16x16xf32>
    %62 = arith.cmpf olt, %60, %61 : vector<16x16xf32>
    %cst_35 = arith.constant 5.000000e-01 : f32
    %63 = vector.broadcast %cst_35 : f32 to vector<16x16xf32>
    %64 = arith.mulf %63, %59 : vector<16x16xf32>
    %65 = arith.mulf %64, %59 : vector<16x16xf32>
    %cst_36 = arith.constant 5.000000e-01 : f32
    %66 = vector.broadcast %cst_36 : f32 to vector<16x16xf32>
    %67 = arith.subf %60, %66 : vector<16x16xf32>
    %68 = arith.select %62, %65, %67 : vector<16x16xi1>, vector<16x16xf32>
    %cst_37 = arith.constant 0.000000e+00 : f32
    %69 = vector.broadcast %cst_37 : f32 to vector<16x16xf32>
    %70 = arith.select %6, %68, %69 : vector<16x16xi1>, vector<16x16xf32>
    %71 = vector.shape_cast %70 : vector<16x16xf32> to vector<1x16x16xf32>
    %cst_38 = arith.constant dense<0.000000e+00> : vector<1xf32>
    %72 = vector.multi_reduction <add>, %71, %cst_38 [1, 2] : vector<1x16x16xf32> to vector<1xf32>
    %73 = vector.shape_cast %72 : vector<1xf32> to vector<1x1x1xf32>
    %74 = vector.extract %73[0, 0, 0] : f32 from vector<1x1x1xf32>
    %75 = arith.extui %6 : vector<16x16xi1> to vector<16x16xi32>
    %76 = arith.sitofp %75 : vector<16x16xi32> to vector<16x16xf32>
    %77 = vector.shape_cast %76 : vector<16x16xf32> to vector<1x16x16xf32>
    %cst_39 = arith.constant dense<0.000000e+00> : vector<1xf32>
    %78 = vector.multi_reduction <add>, %77, %cst_39 [1, 2] : vector<1x16x16xf32> to vector<1xf32>
    %79 = vector.shape_cast %78 : vector<1xf32> to vector<1x1x1xf32>
    %80 = vector.extract %79[0, 0, 0] : f32 from vector<1x1x1xf32>
    %81 = tpu.iota {dimensions = array<i32: 1>} : vector<8x128xi32>
    %cst_40 = arith.constant 0.000000e+00 : f32
    %82 = vector.broadcast %cst_40 : f32 to vector<8x128xf32>
    %c0_i32 = arith.constant 0 : i32
    %83 = vector.broadcast %c0_i32 : i32 to vector<8x128xi32>
    %84 = arith.cmpi eq, %81, %83 : vector<8x128xi32>
    %85 = vector.broadcast %24 : f32 to vector<8x128xf32>
    %86 = arith.select %84, %85, %82 : vector<8x128xi1>, vector<8x128xf32>
    %c1_i32 = arith.constant 1 : i32
    %87 = vector.broadcast %c1_i32 : i32 to vector<8x128xi32>
    %88 = arith.cmpi eq, %81, %87 : vector<8x128xi32>
    %89 = vector.broadcast %49 : f32 to vector<8x128xf32>
    %90 = arith.select %88, %89, %86 : vector<8x128xi1>, vector<8x128xf32>
    %c2_i32 = arith.constant 2 : i32
    %91 = vector.broadcast %c2_i32 : i32 to vector<8x128xi32>
    %92 = arith.cmpi eq, %81, %91 : vector<8x128xi32>
    %93 = vector.broadcast %74 : f32 to vector<8x128xf32>
    %94 = arith.select %92, %93, %90 : vector<8x128xi1>, vector<8x128xf32>
    %c3_i32 = arith.constant 3 : i32
    %95 = vector.broadcast %c3_i32 : i32 to vector<8x128xi32>
    %96 = arith.cmpi eq, %81, %95 : vector<8x128xi32>
    %97 = vector.broadcast %80 : f32 to vector<8x128xf32>
    %98 = arith.select %96, %97, %94 : vector<8x128xi1>, vector<8x128xf32>
    %99 = vector.shape_cast %98 : vector<8x128xf32> to vector<1x8x128xf32>
    %c0_41 = arith.constant 0 : index
    %c0_42 = arith.constant 0 : index
    %c0_43 = arith.constant 0 : index
    %100 = vector.load %arg9[%c0_41, %c0_42, %c0_43] : memref<1x8x128xf32, #tpu.memory_space<vmem>>, vector<1x8x128xf32>
    tpu.vector_store %arg9[%c0_41, %c0_42, %c0_43], %99 {strides = array<i32>} : memref<1x8x128xf32, #tpu.memory_space<vmem>>, vector<1x8x128xf32>,
    return
  }
  func.func @transform_0(%arg0: i32) -> (i32, i32, i32) {
    %c0_i32 = arith.constant 0 : i32
    %c0_i32_0 = arith.constant 0 : i32
    %c0_i32_1 = arith.constant 0 : i32
    return %arg0, %c0_i32, %c0_i32_0 : i32, i32, i32
  }
  func.func @transform_1(%arg0: i32) -> (i32, i32, i32) {
    %c0_i32 = arith.constant 0 : i32
    %c0_i32_0 = arith.constant 0 : i32
    %c0_i32_1 = arith.constant 0 : i32
    return %arg0, %c0_i32, %c0_i32_0 : i32, i32, i32
  }
  func.func @transform_2(%arg0: i32) -> (i32, i32, i32) {
    %c0_i32 = arith.constant 0 : i32
    %c0_i32_0 = arith.constant 0 : i32
    %c0_i32_1 = arith.constant 0 : i32
    return %arg0, %c0_i32, %c0_i32_0 : i32, i32, i32
  }
  func.func @transform_3(%arg0: i32) -> (i32, i32, i32) {
    %c0_i32 = arith.constant 0 : i32
    %c0_i32_0 = arith.constant 0 : i32
    %c0_i32_1 = arith.constant 0 : i32
    return %arg0, %c0_i32, %c0_i32_0 : i32, i32, i32
  }
  func.func @transform_4(%arg0: i32) -> (i32, i32) {
    %c0_i32 = arith.constant 0 : i32
    %c0_i32_0 = arith.constant 0 : i32
    %c0_i32_1 = arith.constant 0 : i32
    return %c0_i32, %c0_i32_0 : i32, i32
  }
  func.func @transform_5(%arg0: i32) -> (i32, i32) {
    %c0_i32 = arith.constant 0 : i32
    %c0_i32_0 = arith.constant 0 : i32
    %c0_i32_1 = arith.constant 0 : i32
    return %c0_i32, %c0_i32_0 : i32, i32
  }
  func.func @transform_6(%arg0: i32) -> (i32, i32) {
    %c0_i32 = arith.constant 0 : i32
    %c0_i32_0 = arith.constant 0 : i32
    %c0_i32_1 = arith.constant 0 : i32
    return %c0_i32, %c0_i32_0 : i32, i32
  }
  func.func @transform_7(%arg0: i32) -> (i32, i32) {
    %c0_i32 = arith.constant 0 : i32
    %c0_i32_0 = arith.constant 0 : i32
    %c0_i32_1 = arith.constant 0 : i32
    return %c0_i32, %c0_i32_0 : i32, i32
  }
  func.func @transform_8(%arg0: i32) -> (i32, i32, i32) {
    %c0_i32 = arith.constant 0 : i32
    %c0_i32_0 = arith.constant 0 : i32
    %c0_i32_1 = arith.constant 0 : i32
    return %arg0, %c0_i32, %c0_i32_0 : i32, i32, i32
  }
}

</mosaic_0001>

<bundles_post_ra>
// kernel: loss_fn.1
= control target key start
LH: loop header
LB: loop body
LE: loop exit
PB: predicated region body
PF: predicated region fallthrough
CT: control target
= control target key end

     0   :  { %s1636_s0 = inlined_call_operand.vmem [shape: f32[2,16,16], index: 0, kind: input, shape index: {}]   ;;  %s1637_s1 = inlined_call_operand.hbm [shape: f32[2,16,16], index: 1, kind: input, shape index: {}]   ;;  %s1638_s2 = inlined_call_operand.hbm [shape: f32[2,8,8], index: 2, kind: input, shape index: {}]   ;;  %s1639_s3 = inlined_call_operand.hbm [shape: f32[2,4,4], index: 3, kind: input, shape index: {}]   ;;  %s1640_s4 = inlined_call_operand.vmem [shape: bf16[16,8], index: 4, kind: input, shape index: {}]   ;;  %s1641_s5 = inlined_call_operand.hbm [shape: bf16[8,16], index: 5, kind: input, shape index: {}]   ;;  %s1642_s6 = inlined_call_operand.vmem [shape: bf16[16,4], index: 6, kind: input, shape index: {}]   ;;  %s1643_s7 = inlined_call_operand.hbm [shape: bf16[4,16], index: 7, kind: input, shape index: {}]   ;;  %s1644_s8 = inlined_call_operand.vmem [shape: f32[2,8,128], index: 8, kind: output, shape index: {}]  }
   0x1   :  { %1655 = sst [smem:[#allocation14_spill]] %s1638_s2 }
   0x2   :  { %1656 = sst [smem:[#allocation15_spill]] %s1641_s5 }
   0x3   :  { %13 = vsyncpa [#allocation3], 0 }
   0x4   :  { %15 = vsyncpa [#allocation3 + $0x1], 0 }
   0x5   :  { %16 = vsyncpa [#allocation5], 0 }
   0x6   :  { %18 = vsyncpa [#allocation5 + $0x1], 0 }
   0x7   :  { %19 = vsyncpa [#allocation8], 0  ;;  %s1319_s27 = smov 0   ;;  %s1321_s28 = smov 0  }
   0x8   :  { %s1323_s29 = smov 0   ;;  %s1325_s30 = smov 0  }
   0x9 LB: > { %s1338_s9 = sadd.s32 4294967295, %s1263_s30   ;;  %p71_p0 = scmp.ne.s32.totalorder %s1255_s28, %s1251_s27  ;;  %s1263_s30 = sphi %s1325_s30, %s1686_s30   ;;  %s1259_s29 = sphi %s1323_s29, %s1685_s29   ;;  %s1255_s28 = sphi %s1321_s28, %s1684_s28   ;;  %s1251_s27 = sphi %s1319_s27, %s1683_s27  }
   0xa   : > { %p1645_p1 = scmp.eq.s32.totalorder %s1338_s9, 0  ;;  %p921_p2 = scmp.ge.s32.totalorder %s1263_s30, 1 }
   0xb   : > { %p244_p3 = scmp.lt.s32.totalorder %s1263_s30, 3  ;;  %s1265_s12 = smov [#allocation7]  }
   0xc   : > { %p1346_p4 = por %p1645_p1, %p71_p0  ;;  %s260_s13 = sshll.u32 %s1265_s12, 4  ;;  %s261_s13 = int_to_ptr.vmem [resolvable:$true] %s260_s13 }
   0xd   : > { %p1350_p5 = pnand %p921_p2, %p244_p3  ;;  %s1357_s14 = sadd.s32 1, %s1263_s30  }
   0xe   : > { %s1657_s10 = scalar_select %p1346_p4, 1, 0 }
   0xf   : > { %s1658_s11 = scalar_select %p1350_p5, 1, 0 }
  0x10   : > { %p1013_p6 = pneg %p1350_p5  ;;  %s55_s16 = ssub.s32 %s1263_s30, %s1357_s14 }
  0x11   : > { %p1367_p8 = scmp.eq.s32.totalorder %s55_s16, 0  ;;  %s58_s18 = sadd.s32 1, %s1259_s29 }
  0x12   : > { %p1361_p7 = pnand %p1013_p6, %p1645_p1  ;;  %s1661_s5 = sld [smem:[#allocation15_spill]] }
  0x13   : > { %s1660_s17 = scalar_select %p1367_p8, 1, 0 }
  0x14   : > { %s1659_s15 = scalar_select %p1361_p7, 1, 0 }
  0x15   : > { %p1648_p11 = pneg %p1361_p7 }
  0x18   : > { %s1075_s21 = scalar_lea.hbm %s1661_s5, 64 }
  0x19   : > { %p1076_p10 = scmp.ne.s32.totalorder %s1661_s5, %s1075_s21  ;;  %p1082_p0 = scmp.lt.u32.totalorder %s1075_s21, %s1661_s5 }
  0x1b   : > { %p1078_p12 = pnand %p1648_p11, %p1076_p10 }
  0x1d   : > { %p1079_p13 = pneg %p1078_p12 }
  0x1f   : > { %p1084_p2 = pnand %p1082_p0, %p1079_p13 }
  0x21   : > { %1087 = shalt.err (!%p1084_p2)
}
  0x22   : > { %s1088_s26 = scalar_lea.vmem %s261_s13, 64  ;;  %p1096_p9 = scmp.lt.s32.totalorder %s261_s13, %s261_s13 }
  0x23   : > { %p1089_p3 = scmp.ne.s32.totalorder %s261_s13, %s1088_s26  ;;  %p1097_p4 = scmp.lt.s32.totalorder %s1088_s26, %s1088_s26 }
  0x25   : > { %p1091_p6 = pnand %p1089_p3, %p1648_p11  ;;  %p1098_p5 = por %p1097_p4, %p1096_p9 }
  0x27   : > { %p1092_p1 = pneg %p1091_p6 }
  0x29   : > { %p1099_p8 = pnand %p1098_p5, %p1092_p1 }
  0x2b   : > { %1102 = shalt.err (!%p1099_p8)
}
  0x2c   : > { %1016 = dma.hbm_to_vmem [thread:$0]  (!%p1361_p7), %s1661_s5, 64, %s261_s13, [#allocation8]  }
  0x2d   : > { %p1662_p10 = scmp.ne.s32.totalorder %s1660_s17, 0  ;;  %p66_p1 = scmp.eq.s32.totalorder %s1263_s30, 0 }
  0x2e   : > { %p1032_p4 = scmp.lt.s32.totalorder %s1263_s30, 2  ;;  %s1404_s19 = sand.u32 1, %s1259_s29  }
  0x2f   : > { %s1399_s16 = scalar_select %p1662_p10, %s1259_s29, %s58_s18  }
  0x30   : > { %s314_s20 = sand.u32 1, %s1263_s30   ;;  %p1664_p5 = scmp.ne.s32.totalorder %s1259_s29, %s1255_s28 }
  0x31   : > { %1663 = sst [smem:[#allocation13_spill]] %s1399_s16  ;;  %s928_s21 = sshll.u32 %s1404_s19, 3 }
  0x32   : > { %p67_p8 = por %p66_p1, %p1664_p5  ;;  %s929_s22 = sshll.u32 %s1263_s30, 7 }
  0x33   : > { %s1666_s2 = sld [smem:[#allocation14_spill]]  ;;  %s318_s17 = scalar_lea.vmem [#allocation4], %s928_s21 }
  0x34   : > { %p1412_p9 = pnand %p1032_p4, %p67_p8  ;;  %s325_s18 = sshll.u32 %s318_s17, 4  ;;  %s1421_s18 = int_to_ptr.vmem [resolvable:$true] %s325_s18 }
  0x35   : > { %s1423_s26 = scalar_lea.sflag [#allocation5], %s314_s20 }
  0x36   : > { %s1665_s23 = scalar_select %p1412_p9, 1, 0 }
  0x37   : > { %p1429_p13 = pneg %p1412_p9 }
  0x39   : > { %s1419_s13 = scalar_lea.hbm %s1666_s2, %s929_s22  ;;  %s1108_s21 = scalar_lea.hbm %s1666_s2, 256 }
  0x3a   : > { %s1103_s27 = scalar_lea.hbm %s1419_s13, 128  ;;  %p1109_p3 = scmp.lt.u32.totalorder %s1419_s13, %s1666_s2 }
  0x3b   : > { %p1104_p12 = scmp.ne.s32.totalorder %s1419_s13, %s1103_s27  ;;  %p1110_p6 = scmp.lt.u32.totalorder %s1108_s21, %s1103_s27 }
  0x3c   : > { %s1667_s12 = scalar_select %p1429_p13, 1, 0 }
  0x3d   : > { %p1106_p0 = pnand %p1429_p13, %p1104_p12  ;;  %p1111_p10 = por %p1110_p6, %p1109_p3 }
  0x3e   : > { %p1112_p1 = scmp.lt.u32.totalorder %s1103_s27, %s1419_s13 }
  0x3f   : > { %p1107_p2 = pneg %p1106_p0 }
  0x40   : > { %p1113_p4 = por %p1112_p1, %p1111_p10 }
  0x42   : > { %p1114_p5 = pnand %p1113_p4, %p1107_p2 }
  0x44   : > { %1117 = shalt.err (!%p1114_p5)
}
  0x45   : > { %s1118_s20 = scalar_lea.vmem %s1421_s18, 128  ;;  %s1266_s22 = smov [#allocation4]  }
  0x46   : > { %p1119_p8 = scmp.ne.s32.totalorder %s1421_s18, %s1118_s20  ;;  %s1123_s24 = sshll.u32 %s1266_s22, 4  ;;  %s1124_s24 = int_to_ptr.vmem [resolvable:$false] %s1123_s24 }
  0x47   : > { %s1125_s25 = scalar_lea.vmem %s1124_s24, 256  ;;  %p1126_p11 = scmp.lt.s32.totalorder %s1421_s18, %s1124_s24 }
  0x48   : > { %p1121_p12 = pnand %p1119_p8, %p1429_p13  ;;  %p1127_p7 = scmp.lt.s32.totalorder %s1125_s25, %s1118_s20 }
  0x4a   : > { %p1122_p0 = pneg %p1121_p12  ;;  %p1128_p3 = por %p1127_p7, %p1126_p11 }
  0x4c   : > { %p1129_p6 = pnand %p1128_p3, %p1122_p0 }
  0x4e   : > { %1132 = shalt.err (!%p1129_p6)
}
  0x4f   : > { %1026 = dma.hbm_to_vmem [thread:$0]  (!%p1412_p9), %s1419_s13, 128, %s1421_s18, %s1423_s26  }
  0x50   : > { %s1267_s27 = smov [#allocation9]   ;;  %s925_s17 = sshll.u32 %s1404_s19, 4 }
  0x51   : > { %s274_s21 = sshll.u32 %s1267_s27, 4  ;;  %s1133_s24 = scalar_lea.hbm %s1643_s7, 32  ;;  %s275_s21 = int_to_ptr.vmem [resolvable:$true] %s274_s21 }
  0x52   : > { %p1134_p7 = scmp.ne.s32.totalorder %s1643_s7, %s1133_s24  ;;  %p1668_p11 = scmp.ne.s32.totalorder %s1659_s15, 0 }
  0x53   : > { %p1140_p4 = scmp.lt.u32.totalorder %s1133_s24, %s1643_s7 }
  0x54   : > { %p1669_p2 = pneg %p1668_p11 }
  0x56   : > { %p1136_p10 = pnand %p1134_p7, %p1669_p2 }
  0x58   : > { %p1137_p1 = pneg %p1136_p10 }
  0x5a   : > { %p1142_p5 = pnand %p1140_p4, %p1137_p1 }
  0x5c   : > { %1145 = shalt.err (!%p1142_p5)
}
  0x5d   : > { %s1146_s13 = scalar_lea.vmem %s275_s21, 32  ;;  %p1670_p12 = pmov %p1669_p2 }
  0x5e   : > { %p1147_p8 = scmp.ne.s32.totalorder %s275_s21, %s1146_s13  ;;  %p1154_p6 = scmp.lt.s32.totalorder %s275_s21, %s275_s21 }
  0x5f   : > { %p1155_p9 = scmp.lt.s32.totalorder %s1146_s13, %s1146_s13 }
  0x60   : > { %p1149_p0 = pnand %p1147_p8, %p1670_p12 }
  0x61   : > { %p1156_p13 = por %p1155_p9, %p1154_p6 }
  0x62   : > { %p1150_p3 = pneg %p1149_p0 }
  0x64   : > { %p1157_p2 = pnand %p1156_p13, %p1150_p3 }
  0x66   : > { %1160 = shalt.err (!%p1157_p2)
}
  0x67   : > { %1019 = dma.hbm_to_vmem [thread:$0]  (!%p1668_p11), %s1643_s7, 32, %s275_s21, [#allocation8]  }
  0x68   : > { %s957_s5 = sshll.u32 %s1263_s30, 8  ;;  %s297_s16 = scalar_lea.vmem [#allocation2], %s925_s17 }
  0x69   : > { %s304_s27 = sshll.u32 %s297_s16, 4  ;;  %s1478_s20 = scalar_lea.hbm %s1637_s1, %s957_s5  ;;  %s1480_s27 = int_to_ptr.vmem [resolvable:$true] %s304_s27 }
  0x6a   : > { %s294_s15 = scalar_lea.sflag [#allocation3], %s1404_s19  ;;  %s1161_s25 = scalar_lea.hbm %s1478_s20, 256 }
  0x6b   : > { %p1162_p9 = scmp.ne.s32.totalorder %s1478_s20, %s1161_s25  ;;  %p1671_p13 = scmp.ne.s32.totalorder %s1667_s12, 0 }
  0x6c   : > { %s1166_s13 = scalar_lea.hbm %s1637_s1, 512  ;;  %p1167_p10 = scmp.lt.u32.totalorder %s1478_s20, %s1637_s1 }
  0x6d   : > { %p1164_p7 = pnand %p1162_p9, %p1671_p13  ;;  %p1168_p1 = scmp.lt.u32.totalorder %s1166_s13, %s1161_s25 }
  0x6e   : > { %p1170_p5 = scmp.lt.u32.totalorder %s1161_s25, %s1478_s20 }
  0x6f   : > { %p1165_p11 = pneg %p1164_p7  ;;  %p1169_p4 = por %p1168_p1, %p1167_p10 }
  0x71   : > { %p1171_p8 = por %p1170_p5, %p1169_p4 }
  0x73   : > { %p1172_p12 = pnand %p1171_p8, %p1165_p11 }
  0x75   : > { %1175 = shalt.err (!%p1172_p12)
}
  0x76   : > { %s1176_s5 = scalar_lea.vmem %s1480_s27, 256  ;;  %s1268_s16 = smov [#allocation2]  }
  0x77   : > { %p1177_p0 = scmp.ne.s32.totalorder %s1480_s27, %s1176_s5  ;;  %s1181_s22 = sshll.u32 %s1268_s16, 4  ;;  %s1182_s22 = int_to_ptr.vmem [resolvable:$false] %s1181_s22 }
  0x78   : > { %s1183_s24 = scalar_lea.vmem %s1182_s22, 512  ;;  %p1184_p2 = scmp.lt.s32.totalorder %s1480_s27, %s1182_s22 }
  0x79   : > { %p1179_p3 = pnand %p1177_p0, %p1671_p13  ;;  %p1185_p9 = scmp.lt.s32.totalorder %s1183_s24, %s1176_s5 }
  0x7b   : > { %p1180_p6 = pneg %p1179_p3  ;;  %p1186_p7 = por %p1185_p9, %p1184_p2 }
  0x7d   : > { %p1187_p10 = pnand %p1186_p7, %p1180_p6 }
  0x7f   : > { %1190 = shalt.err (!%p1187_p10)
}
  0x80   : > { %s1269_s25 = smov 128   ;;  %s1270_s21 = smov 8  }
  0x81   : > { %p1672_p11 = scmp.ne.s32.totalorder %s1665_s23, 0  ;;  %s930_s17 = sshll.u32 %s1404_s19, 2 }
  0x82   : > { %s931_s13 = sshll.u32 %s1263_s30, 6  ;;  %s336_s16 = scalar_lea.vmem [#allocation6], %s930_s17 }
  0x83   : > { %1023 = dma.hbm_to_vmem [thread:$0]  (!%p1672_p11), %s1478_s20, 256, %s1480_s27, %s294_s15, %s1269_s25, %s1269_s25, %s1270_s21  }
  0x84   : > { %s1511_s5 = scalar_lea.hbm %s1639_s3, %s931_s13  ;;  %s343_s22 = sshll.u32 %s336_s16, 4  ;;  %s344_s22 = int_to_ptr.vmem [resolvable:$true] %s343_s22 }
  0x85   : > { %s1191_s24 = scalar_lea.hbm %s1511_s5, 64  ;;  %s1196_s30 = scalar_lea.hbm %s1639_s3, 128 }
  0x86   : > { %p1192_p1 = scmp.ne.s32.totalorder %s1511_s5, %s1191_s24  ;;  %p1197_p8 = scmp.lt.u32.totalorder %s1511_s5, %s1639_s3 }
  0x87   : > { %p1198_p12 = scmp.lt.u32.totalorder %s1196_s30, %s1191_s24  ;;  %p1200_p3 = scmp.lt.u32.totalorder %s1191_s24, %s1511_s5 }
  0x88   : > { %p1194_p4 = pnand %p1192_p1, %p1671_p13 }
  0x89   : > { %p1199_p0 = por %p1198_p12, %p1197_p8 }
  0x8a   : > { %p1195_p5 = pneg %p1194_p4 }
  0x8b   : > { %p1201_p6 = por %p1200_p3, %p1199_p0 }
  0x8d   : > { %p1202_p2 = pnand %p1201_p6, %p1195_p5 }
  0x8f   : > { %1205 = shalt.err (!%p1202_p2)
}
  0x90   : > { %s1206_s25 = scalar_lea.vmem %s344_s22, 64  ;;  %s1271_s21 = smov [#allocation6]  }
  0x91   : > { %p1207_p9 = scmp.ne.s32.totalorder %s344_s22, %s1206_s25  ;;  %s1211_s17 = sshll.u32 %s1271_s21, 4  ;;  %s1212_s17 = int_to_ptr.vmem [resolvable:$false] %s1211_s17 }
  0x92   : > { %s1213_s13 = scalar_lea.vmem %s1212_s17, 128  ;;  %p1214_p1 = scmp.lt.s32.totalorder %s344_s22, %s1212_s17 }
  0x93   : > { %p1209_p7 = pnand %p1207_p9, %p1671_p13  ;;  %p1215_p4 = scmp.lt.s32.totalorder %s1213_s13, %s1206_s25 }
  0x95   : > { %p1210_p10 = pneg %p1209_p7  ;;  %p1216_p11 = por %p1215_p4, %p1214_p1 }
  0x97   : > { %p1217_p8 = pnand %p1216_p11, %p1210_p10 }
  0x99   : > { %1220 = shalt.err (!%p1217_p8)
}
  0x9a   : > { %p1673_p12 = scmp.ne.s32.totalorder %s1665_s23, 0  ;;  %p1674_p5 = scmp.ne.s32.totalorder %s1658_s11, 0 }
  0x9b   : > { %s354_s12 = sand.u32 (!%p1674_p5), 1, %s1255_s28   ;;  %p1675_p13 = scmp.ne.s32.totalorder (!%p1674_p5), %s1657_s10, 0 }
  0x9c   : > { %1029 = dma.hbm_to_vmem [thread:$0]  (!%p1673_p12), %s1511_s5, 64, %s344_s22, %s1423_s26  }
  0x9d   : > { %352 = sbr.rel (%p1674_p5) target bundleno = 838 (0x346), region = 52  ;;  %s933_s2 = sshll.u32 (!%p1674_p5), %s354_s12, 4 }
  0x9e   : > { %s355_s18 = scalar_lea.sflag (!%p1674_p5), [#allocation3], %s354_s12  ;;  %s1534_s16 = scalar_lea.vmem (!%p1674_p5), [#allocation2], %s933_s2 }
  0xa4   : > { %1238 = dma.done.wait (%p1675_p13), %s355_s18, 256  }
  0xa5   : > { %1240 = vsyncadd (%p1675_p13), %s355_s18, 4294967040  ;;  %s363_s23 = sand.u32 1, %s1338_s9   ;;  %s934_s24 = sshll.u32 %s354_s12, 3 }
  0xa6   : > { %s364_s26 = scalar_lea.sflag [#allocation5], %s363_s23  ;;  %s367_s5 = scalar_lea.vmem [#allocation4], %s934_s24 }
  0xa7   : > { %1242 = dma.done.wait (%p1675_p13), %s364_s26, 192  }
  0xa8   : > { %1244 = vsyncadd (%p1675_p13), %s364_s26, 4294967104  ;;  %s935_s11 = sshll.u32 %s354_s12, 2  ;;  %p1676_p11 = scmp.eq.s32.totalorder %s1338_s9, 0 }
  0xa9   : > { %s376_s22 = scalar_lea.vmem [#allocation6], %s935_s11 }
  0xaa   : > { %1246 = dma.done.wait (%p1676_p11), [#allocation8], 96   ;;  %p1677_p0 = pmov %p1676_p11 }
  0xab   : > { %v1272_v0 = vmov 0.0   ;;  %vm1273_vm0 = vmmov 0   ;;  %v483_v1 = vld [vmem:[%s367_s5] sm:$0xff]  ;;  %vm494_vm1 = vcmask 1043456   ;;  %v618_v3 = vld [vmem:[%s376_s22] sm:$0xf] }
  0xac   : > { %1248 = vsyncadd (%p1677_p0), [#allocation8], 4294967200  ;;  %967 = vmatprep.subr.bf16.mxu0 %v1272_v0  ;;  %969 = vmatprep.mubr.msk.bf16.mxu0 %vm1273_vm0, %v1272_v0  ;;  %v484_v2 = vpack.c.bf16 %v483_v1, %v483_v1  ;;  %v619_v4 = vpack.c.bf16 %v618_v3, %v618_v3  ;;  %vm629_vm2 = vcmask 1041408   ;;  %v1073_v6 = vld [vmem:[%s1640_s4] sm:$0xff]   ;;  %vm490_vm3 = vcmask 64512   ;;  %p431_p3 = scmp.lt.s32.totalorder %s1338_s9, 1 }
  0xad   : > { %973 = vmatprep.subr.bf16.mxu1 %v1272_v0  ;;  %975 = vmatprep.mubr.msk.bf16.mxu1 %vm1273_vm0, %v1272_v0  ;;  %v1074_v8 = vld [vmem:[%s1642_s6] sm:$0xff]   ;;  %vm625_vm4 = vcmask 31744   ;;  %v482_v9 = vld [vmem:[#allocation7] sm:$0xf]  ;;  %v617_v12 = vld [vmem:[#allocation9] sm:$0x3] }
  0xae   : > { %v496_v5 = vsel %vm494_vm1, %v484_v2, 0  ;;  %v631_v7 = vsel %vm629_vm2, %v619_v4, 0  ;;  %v544_v10 = vsel %vm494_vm1, %v482_v9, 0  ;;  %v679_v17 = vsel %vm629_vm2, %v617_v12, 0  ;;  %s1688_s9 = smov (!%p431_p3, %s1338_s9), 1  ;;  %v449_v25 = vld [vmem:[%s1534_s16] sm:$0xff] }
  0xaf   : > { %968 = vmatpush3.bf16.msra.mxu0 %v496_v5  ;;  %974 = vmatpush3.bf16.msra.mxu1 %v544_v10  ;;  %s958_s20 = sshll.u32 %s1688_s9, 4  ;;  %v450_v26 = vld [vmem:[%s1534_s16 + $0x8] sm:$0xff]  ;;  %vm467_vm13 = vcmask 130048   ;;  %s940_s2 = sshll.u32 %s1688_s9, 3 }
  0xb0   : > { %979 = vmatprep.subr.bf16.mxu0 %v1272_v0  ;;  %985 = vmatprep.subr.bf16.mxu1 %v1272_v0  ;;  %s435_s21 = scalar_lea.vmem %s1636_s0, %s958_s20  ;;  %s439_s23 = scalar_lea.vmem %s1644_s8, %s940_s2 }
  0xb1   : > { %v441_v23 = vld [vmem:[%s435_s21] sm:$0xff]  ;;  %v442_v24 = vld [vmem:[%s435_s21 + $0x8] sm:$0xff] }
  0xb2   : > { %970 = vmatmul.mubr.msk.bf16.vlgmr.msra.gmra.mrb[0].mxu0 %vm490_vm3, %v1073_v6  ;;  %v451_v27 = vsub.f32 %v449_v25, %v441_v23  ;;  %v452_v28 = vsub.f32 %v450_v26, %v442_v24  ;;  %vm443_vm5 = vcmp.gt.f32.partialorder %v441_v23, 0.0  ;;  %vm444_vm6 = vcmp.gt.f32.partialorder %v442_v24, 0.0 }
  0xb3   : > { %980 = vmatpush3.bf16.msra.mxu0 %v631_v7  ;;  %981 = vmatprep.mubr.msk.bf16.mxu0 %vm1273_vm0, %v1272_v0  ;;  %vm445_vm7 = vcmp.lt.f32.partialorder %v441_v23, 64.0  ;;  %vm446_vm8 = vcmp.lt.f32.partialorder %v442_v24, 64.0 }
  0xb4   : > { %v453_v29 = vand.u32 2147483647, %v451_v27  ;;  %v454_v30 = vand.u32 2147483647, %v452_v28  ;;  %v457_v31 = vmul.f32 0.5, %v451_v27  ;;  %v458_v32 = vmul.f32 0.5, %v452_v28  ;;  %vm1585_vm9 = vmand %vm443_vm5, %vm445_vm7 }
  0xb5   : > { %vm1589_vm12 = vmand %vm444_vm6, %vm446_vm8 }
  0xb6   : > { %v459_v33 = vmul.f32 %v457_v31, %v451_v27  ;;  %v460_v34 = vmul.f32 %v458_v32, %v452_v28  ;;  %v941_v35 = vadd.f32 -0.5, %v453_v29  ;;  %v942_v36 = vadd.f32 -0.5, %v454_v30 }
  0xb7   : > { %vm455_vm10 = vcmp.lt.f32.partialorder %v453_v29, 1.0  ;;  %vm456_vm11 = vcmp.lt.f32.partialorder %v454_v30, 1.0 }
  0xb8   : > { %v463_v39 = vsel %vm455_vm10, %v459_v33, %v941_v35  ;;  %v464_v40 = vsel %vm456_vm11, %v460_v34, %v942_v36 }
  0xb9   : > { %v465_v41 = vsel %vm1585_vm9, %v463_v39, 0.0  ;;  %v466_v42 = vsel %vm1589_vm12, %v464_v40, 0.0 }
  0xba   : > { %982 = vmatmul.mubr.msk.bf16.vlgmr.msra.gmra.mrb[4].mxu0 %vm625_vm4, %v1074_v8  ;;  %v468_v43 = vsel %vm467_vm13, %v465_v41, 0.0  ;;  %v469_v44 = vsel %vm467_vm13, %v466_v42, 0.0 }
  0xbb   : > { %v470_v45 = vadd.f32 %v469_v44, %v468_v43 }
  0xbd   : > { %471 = vadd.xlane.f32.xlu0 %v470_v45 }
 0x14a   : > { %v472_v30 = vpop.xlane.xlu0 %471 }
 0x14b   : > { %v473_v31 = vrot.slane %v472_v30, 4 }
 0x14d   : > { %v474_v32 = vadd.f32 %v473_v31, %v472_v30 }
 0x185   : > { %v532_v11 = vpop.f32.mrb[0].mxu0 }
 0x186   : > { %v971_v13 = vpop.f32.mrb[1].mxu0 }
 0x187   : > { %v535_v14 = vpop.f32.mrb[2].mxu0 }
 0x188   : > { %v539_v15 = vpack.c.bf16 %v535_v14, %v532_v11  ;;  %v972_v16 = vpop.f32.mrb[3].mxu0 }
 0x18a   : > { %976 = vmatmul.mubr.msk.bf16.vlgmr.msra.gmra.mrb[0].mxu1 %vm490_vm3, %v539_v15 }
 0x18b   : > { %986 = vmatpush3.bf16.msra.mxu1 %v679_v17  ;;  %987 = vmatprep.mubr.msk.bf16.mxu1 %vm1273_vm0, %v1272_v0 }
 0x18d   : > { %v667_v18 = vpop.f32.mrb[4].mxu0 }
 0x18e   : > { %v983_v19 = vpop.f32.mrb[5].mxu0 }
 0x18f   : > { %v670_v20 = vpop.f32.mrb[6].mxu0 }
 0x190   : > { %v674_v21 = vpack.c.bf16 %v670_v20, %v667_v18  ;;  %v984_v22 = vpop.f32.mrb[7].mxu0  ;;  %v953_v20 = vsel %vm1585_vm9, 1.0, %v1272_v0 }
 0x191   : > { %v754_v26 = vsel %vm467_vm13, %v953_v20, 0.0 }
 0x192   : > { %988 = vmatmul.mubr.msk.bf16.vlgmr.msra.gmra.mrb[4].mxu1 %vm625_vm4, %v674_v21  ;;  %v954_v21 = vsel %vm1589_vm12, 1.0, %v1272_v0  ;;  %v475_v0 = vrot.slane %v474_v32, 2 }
 0x193   : > { %v755_v27 = vsel %vm467_vm13, %v954_v21, 0.0 }
 0x194   : > { %v756_v29 = vadd.f32 %v755_v27, %v754_v26  ;;  %v476_v33 = vadd.f32 %v475_v0, %v474_v32 }
 0x196   : > { %v477_v34 = vrot.slane %v476_v33, 1 }
 0x198   : > { %v478_v35 = vadd.f32 %v477_v34, %v476_v33 }
 0x19a   : > { %991 = vpush %v478_v35 }
 0x1cb   : > { %s992_s17 = spop %991 }
 0x25d   : > { %v580_v46 = vpop.f32.mrb[0].mxu1 }
 0x25e   : > { %v587_v47 = vsub.f32 %v580_v46, %v441_v23  ;;  %v977_v48 = vpop.f32.mrb[1].mxu1 }
 0x25f   : > { %v583_v49 = vpop.f32.mrb[2].mxu1 }
 0x260   : > { %v589_v50 = vand.u32 2147483647, %v587_v47  ;;  %v593_v51 = vmul.f32 0.5, %v587_v47  ;;  %v588_v52 = vsub.f32 %v583_v49, %v442_v24  ;;  %v978_v53 = vpop.f32.mrb[3].mxu1 }
 0x262   : > { %v595_v54 = vmul.f32 %v593_v51, %v587_v47  ;;  %v946_v55 = vadd.f32 -0.5, %v589_v50  ;;  %v590_v56 = vand.u32 2147483647, %v588_v52  ;;  %v594_v57 = vmul.f32 0.5, %v588_v52 }
 0x263   : > { %vm591_vm14 = vcmp.lt.f32.partialorder %v589_v50, 1.0 }
 0x264   : > { %v596_v58 = vmul.f32 %v594_v57, %v588_v52  ;;  %v947_v59 = vadd.f32 -0.5, %v590_v56  ;;  %vm592_vm15 = vcmp.lt.f32.partialorder %v590_v56, 1.0  ;;  %v599_v60 = vsel %vm591_vm14, %v595_v54, %v946_v55 }
 0x265   : > { %v715_v61 = vpop.f32.mrb[4].mxu1  ;;  %v601_v62 = vsel %vm1585_vm9, %v599_v60, 0.0  ;;  %v766_v57 = vlaneseq }
 0x266   : > { %v722_v63 = vsub.f32 %v715_v61, %v441_v23  ;;  %v989_v1 = vpop.f32.mrb[5].mxu1  ;;  %v600_v2 = vsel %vm592_vm15, %v596_v58, %v947_v59  ;;  %v603_v5 = vsel %vm467_vm13, %v601_v62, 0.0  ;;  %v769_v59 = vstv %s992_s17 }
 0x267   : > { %v718_v3 = vpop.f32.mrb[6].mxu1  ;;  %v602_v4 = vsel %vm1589_vm12, %v600_v2, 0.0  ;;  %v767_v58 = vand.u32 127, %v766_v57 }
 0x268   : > { %v724_v6 = vand.u32 2147483647, %v722_v63  ;;  %v728_v7 = vmul.f32 0.5, %v722_v63  ;;  %v723_v8 = vsub.f32 %v718_v3, %v442_v24  ;;  %v990_v9 = vpop.f32.mrb[7].mxu1  ;;  %v604_v10 = vsel %vm467_vm13, %v602_v4, 0.0 }
 0x269   : > { %v605_v11 = vadd.f32 %v604_v10, %v603_v5  ;;  %vm768_vm2 = vcmp.eq.s32.totalorder %v767_v58, 0  ;;  %vm771_vm3 = vcmp.eq.s32.totalorder %v767_v58, 1  ;;  %vm774_vm4 = vcmp.eq.s32.totalorder %v767_v58, 2 }
 0x26a   : > { %v730_v12 = vmul.f32 %v728_v7, %v722_v63  ;;  %v951_v13 = vadd.f32 -0.5, %v724_v6  ;;  %v725_v14 = vand.u32 2147483647, %v723_v8  ;;  %v729_v15 = vmul.f32 0.5, %v723_v8 }
 0x26b   : > { %606 = vadd.xlane.f32.xlu0 %v605_v11  ;;  %vm726_vm0 = vcmp.lt.f32.partialorder %v724_v6, 1.0  ;;  %v770_v60 = vsel %vm768_vm2, %v769_v59, 0.0  ;;  %vm777_vm5 = vcmp.eq.s32.totalorder %v767_v58, 3 }
 0x26c   : > { %v731_v16 = vmul.f32 %v729_v15, %v723_v8  ;;  %v952_v17 = vadd.f32 -0.5, %v725_v14  ;;  %vm727_vm1 = vcmp.lt.f32.partialorder %v725_v14, 1.0  ;;  %v734_v18 = vsel %vm726_vm0, %v730_v12, %v951_v13 }
 0x26d   : > { %v736_v19 = vsel %vm1585_vm9, %v734_v18, 0.0 }
 0x26e   : > { %v735_v22 = vsel %vm727_vm1, %v731_v16, %v952_v17  ;;  %v738_v24 = vsel %vm467_vm13, %v736_v19, 0.0 }
 0x26f   : > { %v737_v23 = vsel %vm1589_vm12, %v735_v22, 0.0 }
 0x270   : > { %v739_v25 = vsel %vm467_vm13, %v737_v23, 0.0 }
 0x271   : > { %v740_v28 = vadd.f32 %v739_v25, %v738_v24 }
 0x273   : > { %741 = vadd.xlane.f32.xlu1 %v740_v28 }
 0x277   : > { %757 = vadd.xlane.f32.xlu1 %v756_v29 }
 0x2f8   : > { %v607_v36 = vpop.xlane.xlu0 %606 }
 0x2f9   : > { %v608_v37 = vrot.slane %v607_v36, 4 }
 0x2fb   : > { %v609_v38 = vadd.f32 %v608_v37, %v607_v36 }
 0x2fd   : > { %v610_v39 = vrot.slane %v609_v38, 2 }
 0x2ff   : > { %v611_v40 = vadd.f32 %v610_v39, %v609_v38 }
 0x300   : > { %v742_v41 = vpop.xlane.xlu1 %741 }
 0x301   : > { %v743_v42 = vrot.slane %v742_v41, 4  ;;  %v612_v43 = vrot.slane %v611_v40, 1 }
 0x303   : > { %v744_v44 = vadd.f32 %v743_v42, %v742_v41  ;;  %v613_v45 = vadd.f32 %v612_v43, %v611_v40 }
 0x304   : > { %v758_v46 = vpop.xlane.xlu1 %757 }
 0x305   : > { %v745_v47 = vrot.slane %v744_v44, 2  ;;  %v759_v48 = vrot.slane %v758_v46, 4  ;;  %993 = vpush %v613_v45 }
 0x307   : > { %v760_v49 = vadd.f32 %v759_v48, %v758_v46  ;;  %v746_v50 = vadd.f32 %v745_v47, %v744_v44 }
 0x309   : > { %v761_v51 = vrot.slane %v760_v49, 2  ;;  %v747_v52 = vrot.slane %v746_v50, 1 }
 0x30b   : > { %v762_v53 = vadd.f32 %v761_v51, %v760_v49  ;;  %v748_v54 = vadd.f32 %v747_v52, %v746_v50 }
 0x30d   : > { %995 = vpush %v748_v54  ;;  %v763_v55 = vrot.slane %v762_v53, 1 }
 0x30f   : > { %v764_v56 = vadd.f32 %v763_v55, %v762_v53 }
 0x311   : > { %997 = vpush %v764_v56 }
 0x336   : > { %s994_s13 = spop %993 }
 0x337   : > { %v772_v61 = vstv %s994_s13 }
 0x338   : > { %v773_v63 = vsel %vm771_vm3, %v772_v61, %v770_v60 }
 0x33e   : > { %s996_s12 = spop %995 }
 0x33f   : > { %v775_v62 = vstv %s996_s12 }
 0x340   : > { %v776_v1 = vsel %vm774_vm4, %v775_v62, %v773_v63 }
 0x342   : > { %s998_s24 = spop %997 }
 0x343   : > { %v778_v2 = vstv %s998_s24 }
 0x344   : > { %v779_v3 = vsel %vm777_vm5, %v778_v2, %v776_v1 }
 0x345   : > { %780 = vst [vmem:[%s439_s23] sm:$0xff] %v779_v3 }
 0x346 PF: > { %s1682_s26 = sld [smem:[#allocation13_spill]]  ;;  %p22_p6 = scmp.ge.s32.totalorder %s1357_s14, 4  }
 0x347   : > { %s1683_s27 = smov %s1255_s28  ;;  %s1684_s28 = smov %s1259_s29 }
 0x348   : > { %s1686_s30 = smov %s1357_s14  ;;  %24 = sbr.rel (!%p22_p6) target bundleno = 9 (0x9), region = 127 }
 0x34c   : > { %s1685_s29 = smov %s1682_s26 }
 0x34f   :  { %800 = vsyncpa [#allocation3], 1 }
 0x350   :  { %802 = vsyncpa [#allocation3 + $0x1], 1 }
 0x351   :  { %803 = vsyncpa [#allocation5], 1 }
 0x352   :  { %805 = vsyncpa [#allocation5 + $0x1], 1 }
 0x353   :  { %806 = vsyncpa [#allocation8], 1 }

</bundles_post_ra>
